<compile_context>
chip_gen: v5e
topology: v5e:2x2
jax: 0.10.0
libtpu: 0.0.40
codegen_flags: <defaults>
</compile_context>

<pallas_src>
import jax
import jax.numpy as jnp
import numpy as np
from jax.experimental import pallas as pl
from jax.experimental.pallas import tpu as pltpu

LANE = 128
TARGET_BLOCK_BYTES = 2 * 1024 * 1024  # ~2 MiB output per grid step


def _sublane(dtype):
    # f32 -> 8, bf16 -> 16, int8/fp8 -> 32 (dtype-aware sublane packing).
    return {4: 8, 2: 16, 1: 32}.get(jnp.dtype(dtype).itemsize, 8)


def _choose_tiles(B, F, itemsize, sub):
    # Flat-dim tile: a multiple of 128 dividing F, or the full extent F when
    # F is not a multiple of 128 (full-extent blocks are always legal).
    if F % LANE != 0:
        f_tile = F
    else:
        f_tile = F
        while f_tile * itemsize > TARGET_BLOCK_BYTES and f_tile % (2 * LANE) == 0:
            f_tile //= 2

    # Batch tile: a multiple of the sublane count dividing B, or full extent.
    if B % sub != 0:
        b_tile = B
    else:
        b_tile = sub
        while (b_tile * 2 <= B and B % (b_tile * 2) == 0
               and b_tile * 2 * f_tile * itemsize <= TARGET_BLOCK_BYTES):
            b_tile *= 2

    # v7x has 2 TensorCores per chip: prefer >=2 parallel grid blocks when the
    # split keeps legal (sublane-/lane-multiple) block shapes.
    if (B // b_tile) * (F // f_tile) < 2:
        if b_tile % (2 * sub) == 0:
            b_tile //= 2
        elif f_tile % (2 * LANE) == 0:
            f_tile //= 2
    return b_tile, f_tile


def _const_input_kernel(const_ref, out_ref):
    # Broadcast the (1, f_tile) constant across the batch tile; full-vreg
    # stores to this grid step's (b_tile, f_tile) output block.
    out_ref[...] = jnp.broadcast_to(const_ref[...], out_ref.shape)


def _constant_input_forward(x, const):
    """x: (B, ...) — only the batch dim is used.  const: (1, C, H, W).
    Returns (B, C, H, W) = const repeated across the batch."""
    B = x.shape[0]
    _, C, H, W = const.shape
    F = C * H * W
    dtype = const.dtype
    itemsize = jnp.dtype(dtype).itemsize
    sub = _sublane(dtype)

    b_tile, f_tile = _choose_tiles(B, F, itemsize, sub)
    n_b, n_f = B // b_tile, F // f_tile

    const_flat = const.reshape(1, F)

    out = pl.pallas_call(
        _const_input_kernel,
        out_shape=jax.ShapeDtypeStruct((B, F), dtype),
        grid_spec=pltpu.PrefetchScalarGridSpec(
            num_scalar_prefetch=0,
            # Flat-tile axis OUTER, batch axis INNER: the constant's block
            # index is fixed across the inner loop -> fetched from HBM once.
            grid=(n_f, n_b),
            in_specs=[pl.BlockSpec((1, f_tile), lambda fi, bi: (0, fi))],
            out_specs=pl.BlockSpec((b_tile, f_tile), lambda fi, bi: (bi, fi)),
        ),
        compiler_params=pltpu.CompilerParams(
            dimension_semantics=("parallel", "parallel")),
        cost_estimate=pl.CostEstimate(
            flops=0, transcendentals=0,
            bytes_accessed=(B + 1) * F * itemsize),
    )(const_flat)

    return out.reshape(B, C, H, W)


constant_input_forward = jax.jit(_constant_input_forward)


def reference(x, const):
    """Pure-JAX reference matching the PyTorch forward."""
    B = x.shape[0]
    _, C, H, W = const.shape
    return jnp.broadcast_to(const, (B, C, H, W))


if __name__ == "__main__":
    key = jax.random.PRNGKey(0)
    k1, k2, k3, k4 = jax.random.split(key, 4)

    # Config 1: module defaults (channel=4, size=4) -> F=64 (< 128 lanes,
    # exercises the full-extent, no-padding path).
    B, channel, size, style_dim = 2, 4, 4, 8
    latent = jax.random.normal(k1, (B, style_dim), dtype=jnp.float32)
    const = jax.random.normal(k2, (1, channel, size, size), dtype=jnp.float32)
    out = jax.block_until_ready(constant_input_forward(latent, const))
    ref = jax.block_until_ready(reference(latent, const))
    assert out.shape == (B, channel, size, size), out.shape
    np.testing.assert_allclose(np.asarray(out), np.asarray(ref), rtol=0, atol=0)

    # Config 2: exercises the sublane-blocked, multi-block (dual-TC) path
    # (F = 32*4*4 = 512, batch tiled into two (8, 512) blocks).
    B2, channel2 = 16, 32
    latent2 = jax.random.normal(k3, (B2, style_dim), dtype=jnp.float32)
    const2 = jax.random.normal(k4, (1, channel2, size, size), dtype=jnp.float32)
    out2 = jax.block_until_ready(constant_input_forward(latent2, const2))
    ref2 = jax.block_until_ready(reference(latent2, const2))
    np.testing.assert_allclose(np.asarray(out2), np.asarray(ref2), rtol=0, atol=0)

    print("KERNEL_OK")
</pallas_src>

<mosaic_0001>
module attributes {stable_mosaic.version = 11 : i64} {
  func.func @_const_input_kernel(%arg0: i32, %arg1: i32, %arg2: memref<1x64xf32, #tpu.memory_space<vmem>>, %arg3: memref<2x64xf32, #tpu.memory_space<vmem>>) attributes {dimension_semantics = [#tpu.dimension_semantics<parallel>, #tpu.dimension_semantics<parallel>], iteration_bounds = array<i64: 1, 1>, scalar_prefetch = 0 : i64, scratch_operands = 0 : i64, tpu.core_type = #tpu.core_type<tc>, window_params = [{transform_indices = @transform_0, window_bounds = array<i64: 1, 64>}, {transform_indices = @transform_1, window_bounds = array<i64: 2, 64>}]} {
    %c0 = arith.constant 0 : index
    %c0_0 = arith.constant 0 : index
    %0 = vector.load %arg2[%c0, %c0_0] : memref<1x64xf32, #tpu.memory_space<vmem>>, vector<1x64xf32>
    %1 = vector.shape_cast %0 : vector<1x64xf32> to vector<1x64xf32>
    %2 = vector.broadcast %1 : vector<1x64xf32> to vector<2x64xf32>
    %c0_1 = arith.constant 0 : index
    %c0_2 = arith.constant 0 : index
    %3 = vector.load %arg3[%c0_1, %c0_2] : memref<2x64xf32, #tpu.memory_space<vmem>>, vector<2x64xf32>
    tpu.vector_store %arg3[%c0_1, %c0_2], %2 {strides = array<i32>} : memref<2x64xf32, #tpu.memory_space<vmem>>, vector<2x64xf32>,
    return
  }
  func.func @transform_0(%arg0: i32, %arg1: i32) -> (i32, i32) {
    %c0_i32 = arith.constant 0 : i32
    %c0_i32_0 = arith.constant 0 : i32
    return %c0_i32, %arg0 : i32, i32
  }
  func.func @transform_1(%arg0: i32, %arg1: i32) -> (i32, i32) {
    %c0_i32 = arith.constant 0 : i32
    return %arg1, %arg0 : i32, i32
  }
}

</mosaic_0001>

<bundles_post_ra>
// kernel: _constant_input_forward.1
= control target key start
LH: loop header
LB: loop body
LE: loop exit
PB: predicated region body
PF: predicated region fallthrough
CT: control target
= control target key end

     0   :  { %vm12_vm0 = vcmask 517120   ;;  %s35_s0 = inlined_call_operand.vmem [shape: f32[1,64], index: 0, kind: input, shape index: {}]   ;;  %s36_s1 = inlined_call_operand.vmem [shape: f32[2,64], index: 1, kind: output, shape index: {}]  }
   0x1   :  { %v18_v0 = vld [vmem:[%s35_s0] ss:$0 sm:$0xff] }
   0x2   :  { %13 = vst.msk [vmem:[%s36_s1] sm:$0x3] %vm12_vm0, %v18_v0 }

</bundles_post_ra>
